<compile_context>
chip_gen: v7x
topology: tpu7x:2x2x1
jax: 0.10.0
libtpu: 0.0.40
codegen_flags: <defaults>
</compile_context>

<pallas_src>
import jax
import jax.numpy as jnp
from jax.experimental import pallas as pl
from jax.experimental.pallas import tpu as pltpu


def _ceil_to(x: int, m: int) -> int:
    return ((x + m - 1) // m) * m


# ---------------------------------------------------------------------------
# Kernel
# ---------------------------------------------------------------------------

def _make_policy_kernel(state_dim: int, hidden_dim: int, action_dim: int):
    """fc1+ReLU -> fc2 -> softmax in the batch-on-lanes ("transposed") layout.

    Per-grid-step ref layouts (batch lives on the 128-wide lane axis):
      xt_ref  : (state_dim, TB)            x^T tile
      w1_ref  : (hidden_dim, state_dim)    fc1 weight, PyTorch layout (out, in)
      b1_ref  : (hidden_dim, 1)
      w2_ref  : (action_dim, hidden_dim)   fc2 weight, PyTorch layout (out, in)
      b2_ref  : (action_dim, 1)
      out_ref : (action_dim, TB)           probs^T tile (lane-dense stores)
    """
    small_k = state_dim <= 16   # contraction too small to be worth an MXU pass

    def kernel(xt_ref, w1_ref, b1_ref, w2_ref, b2_ref, out_ref):
        xt = xt_ref[...]                                   # (state_dim, TB)

        # ---- fc1 + ReLU: h^T = relu(W1 @ x^T + b1), shape (hidden, TB) ------
        if small_k:
            # K = state_dim (3): one broadcast FMA per input feature on the VPU.
            # W1[:, k] broadcast cost is O(hidden) per feature (batch-independent);
            # the x^T rows are already lane-dense.
            h = b1_ref[...] + w1_ref[:, 0:1] * xt[0:1, :]
            for k in range(1, state_dim):
                h = h + w1_ref[:, k:k + 1] * xt[k:k + 1, :]
        else:
            h = jnp.dot(w1_ref[...], xt,
                        preferred_element_type=jnp.float32) + b1_ref[...]
        h = jnp.maximum(h, 0.0)

        # ---- fc2 on the MXU: logits^T = W2 @ h^T + b2, shape (action, TB) ----
        # K = hidden = 128: a dense MXU matmul replaces per-column lane
        # reductions and produces the lane-dense logits^T directly.
        logits = jnp.dot(w2_ref[...], h,
                         preferred_element_type=jnp.float32) + b2_ref[...]

        # ---- softmax over the action axis (axis 0 in this layout) -----------
        if action_dim == 1:
            probs = jnp.ones_like(logits)     # exact: softmax of a singleton
        else:
            z = logits - jnp.max(logits, axis=0, keepdims=True)
            e = jnp.exp(z)
            probs = e / jnp.sum(e, axis=0, keepdims=True)

        out_ref[...] = probs.astype(out_ref.dtype)

    return kernel


# ---------------------------------------------------------------------------
# Wrapper
# ---------------------------------------------------------------------------

def policy_net_forward(x, w1, b1, w2, b2, *, block_batch=None):
    """x: (B, state_dim); w1: (hidden, state); b1: (hidden,);
       w2: (action, hidden); b2: (action,)  -- PyTorch nn.Linear parameter layouts."""
    B, state_dim = x.shape
    hidden_dim = w1.shape[0]
    action_dim = w2.shape[0]

    if action_dim == 1:
        # softmax over a single column is identically 1.0 for every row, so the
        # module's forward output is constant: a plain XLA fill is strictly
        # cheaper than any kernel launch.  (Exact w.r.t. the PyTorch module as
        # written; remove this gate if the softmax head ever changes.)
        return jnp.ones((B, 1), dtype=jnp.float32)

    # ---- generic path: batch tiled along the lane axis, "parallel" grid ------
    b_pad128 = max(128, _ceil_to(B, 128))
    if block_batch is None:
        tb = min(4096, b_pad128)
        # Cap the tile so the grid has >= 2 steps when the batch allows, so a
        # 2-TC chip (v7x) can shard the "parallel" axis across both cores.
        half = (b_pad128 // 2) // 128 * 128
        if half >= 128:
            tb = min(tb, half)
    else:
        tb = min(max(128, _ceil_to(int(block_batch), 128)), b_pad128)
    b_pad = _ceil_to(b_pad128, tb)
    grid = (b_pad // tb,)

    # Present x transposed: (state_dim, b_pad) with the batch lane-dense.
    xt = jnp.pad(x, ((0, b_pad - B), (0, 0))).T
    b1r = b1.reshape(hidden_dim, 1)
    b2r = b2.reshape(action_dim, 1)

    kernel = _make_policy_kernel(state_dim, hidden_dim, action_dim)
    out_t = pl.pallas_call(
        kernel,
        out_shape=jax.ShapeDtypeStruct((action_dim, b_pad), jnp.float32),
        grid_spec=pltpu.PrefetchScalarGridSpec(
            num_scalar_prefetch=0,
            grid=grid,
            in_specs=[
                pl.BlockSpec((state_dim, tb), lambda i: (0, i)),
                # Weights/biases (~66 KiB total) stay resident with constant
                # block indices.
                pl.BlockSpec((hidden_dim, state_dim), lambda i: (0, 0)),
                pl.BlockSpec((hidden_dim, 1), lambda i: (0, 0)),
                pl.BlockSpec((action_dim, hidden_dim), lambda i: (0, 0)),
                pl.BlockSpec((action_dim, 1), lambda i: (0, 0)),
            ],
            out_specs=pl.BlockSpec((action_dim, tb), lambda i: (0, i)),
        ),
        compiler_params=pltpu.CompilerParams(
            dimension_semantics=("parallel",)),
    )(xt, w1, b1r, w2, b2r)

    # Tiny (action_dim, B) -> (B, action_dim) transpose in the wrapper.
    return out_t[:, :B].T


def init_params(key, state_dim, hidden_dim, action_dim):
    """torch.nn.Linear-style init: U[-1/sqrt(fan_in), 1/sqrt(fan_in)]."""
    k1, k2, k3, k4 = jax.random.split(key, 4)
    bound1 = 1.0 / jnp.sqrt(state_dim)
    bound2 = 1.0 / jnp.sqrt(hidden_dim)
    w1 = jax.random.uniform(k1, (hidden_dim, state_dim), jnp.float32, -bound1, bound1)
    b1 = jax.random.uniform(k2, (hidden_dim,), jnp.float32, -bound1, bound1)
    w2 = jax.random.uniform(k3, (action_dim, hidden_dim), jnp.float32, -bound2, bound2)
    b2 = jax.random.uniform(k4, (action_dim,), jnp.float32, -bound2, bound2)
    return w1, b1, w2, b2


def _reference(x, w1, b1, w2, b2):
    hp = jax.lax.Precision.HIGHEST
    h = jnp.maximum(jnp.dot(x, w1.T, precision=hp) + b1, 0.0)
    return jax.nn.softmax(jnp.dot(h, w2.T, precision=hp) + b2, axis=1)


if __name__ == "__main__":
    key = jax.random.PRNGKey(0)
    kx1, kp1, kx2, kp2 = jax.random.split(key, 4)

    # Config A: the module's actual Pendulum-v1 sizes (3 -> 128 -> 1), batch 8.
    state_dim, hidden_dim, action_dim = 3, 128, 1
    batch = 8
    x = jax.random.normal(kx1, (batch, state_dim), dtype=jnp.float32)
    w1, b1, w2, b2 = init_params(kp1, state_dim, hidden_dim, action_dim)
    out = jax.block_until_ready(policy_net_forward(x, w1, b1, w2, b2))
    ref = _reference(x, w1, b1, w2, b2)
    assert out.shape == (batch, action_dim)
    assert jnp.allclose(out, ref, atol=1e-5, rtol=1e-5)

    # Config B: exercise the generic tiled kernel (action_dim > 1, ragged batch
    # that forces zero-padding and a multi-step "parallel" grid: tb=128, grid=2).
    state_dim2, hidden_dim2, action_dim2 = 3, 128, 4
    batch2 = 200
    x2 = jax.random.normal(kx2, (batch2, state_dim2), dtype=jnp.float32)
    w1b, b1b, w2b, b2b = init_params(kp2, state_dim2, hidden_dim2, action_dim2)
    out2 = jax.block_until_ready(policy_net_forward(x2, w1b, b1b, w2b, b2b))
    ref2 = _reference(x2, w1b, b1b, w2b, b2b)
    assert out2.shape == (batch2, action_dim2)
    assert jnp.allclose(out2, ref2, atol=1e-5, rtol=1e-4)

    print("KERNEL_OK")
</pallas_src>

<mosaic_0001>
module attributes {stable_mosaic.version = 11 : i64} {
  func.func @kernel(%arg0: i32, %arg1: memref<3x128xf32, #tpu.memory_space<vmem>>, %arg2: memref<128x3xf32, #tpu.memory_space<vmem>>, %arg3: memref<128x1xf32, #tpu.memory_space<vmem>>, %arg4: memref<4x128xf32, #tpu.memory_space<vmem>>, %arg5: memref<4x1xf32, #tpu.memory_space<vmem>>, %arg6: memref<4x128xf32, #tpu.memory_space<vmem>>) attributes {dimension_semantics = [#tpu.dimension_semantics<parallel>], iteration_bounds = array<i64: 2>, scalar_prefetch = 0 : i64, scratch_operands = 0 : i64, tpu.core_type = #tpu.core_type<tc>, window_params = [{transform_indices = @transform_0, window_bounds = array<i64: 3, 128>}, {pipeline_mode = #tpu.pipeline_mode<synchronous>, transform_indices = @transform_1, window_bounds = array<i64: 128, 3>}, {pipeline_mode = #tpu.pipeline_mode<synchronous>, transform_indices = @transform_2, window_bounds = array<i64: 128, 1>}, {pipeline_mode = #tpu.pipeline_mode<synchronous>, transform_indices = @transform_3, window_bounds = array<i64: 4, 128>}, {pipeline_mode = #tpu.pipeline_mode<synchronous>, transform_indices = @transform_4, window_bounds = array<i64: 4, 1>}, {transform_indices = @transform_5, window_bounds = array<i64: 4, 128>}]} {
    %c0 = arith.constant 0 : index
    %c0_0 = arith.constant 0 : index
    %0 = vector.load %arg1[%c0, %c0_0] : memref<3x128xf32, #tpu.memory_space<vmem>>, vector<3x128xf32>
    %c0_1 = arith.constant 0 : index
    %c0_2 = arith.constant 0 : index
    %1 = vector.load %arg3[%c0_1, %c0_2] : memref<128x1xf32, #tpu.memory_space<vmem>>, vector<128x1xf32>
    %c0_3 = arith.constant 0 : index
    %c0_4 = arith.constant 0 : index
    %2 = vector.load %arg2[%c0_3, %c0_4] : memref<128x3xf32, #tpu.memory_space<vmem>>, vector<128x1xf32>
    %3 = vector.extract_strided_slice %0 {offsets = [0, 0], sizes = [1, 128], strides = [1, 1]} : vector<3x128xf32> to vector<1x128xf32>
    %4 = vector.broadcast %2 : vector<128x1xf32> to vector<128x128xf32>
    %5 = vector.broadcast %3 : vector<1x128xf32> to vector<128x128xf32>
    %6 = arith.mulf %4, %5 : vector<128x128xf32>
    %7 = vector.broadcast %1 : vector<128x1xf32> to vector<128x128xf32>
    %8 = arith.addf %7, %6 : vector<128x128xf32>
    %c0_5 = arith.constant 0 : index
    %c1 = arith.constant 1 : index
    %9 = vector.load %arg2[%c0_5, %c1] : memref<128x3xf32, #tpu.memory_space<vmem>>, vector<128x1xf32>
    %10 = vector.extract_strided_slice %0 {offsets = [1, 0], sizes = [1, 128], strides = [1, 1]} : vector<3x128xf32> to vector<1x128xf32>
    %11 = vector.broadcast %9 : vector<128x1xf32> to vector<128x128xf32>
    %12 = vector.broadcast %10 : vector<1x128xf32> to vector<128x128xf32>
    %13 = arith.mulf %11, %12 : vector<128x128xf32>
    %14 = arith.addf %8, %13 : vector<128x128xf32>
    %c0_6 = arith.constant 0 : index
    %c2 = arith.constant 2 : index
    %15 = vector.load %arg2[%c0_6, %c2] : memref<128x3xf32, #tpu.memory_space<vmem>>, vector<128x1xf32>
    %16 = vector.extract_strided_slice %0 {offsets = [2, 0], sizes = [1, 128], strides = [1, 1]} : vector<3x128xf32> to vector<1x128xf32>
    %17 = vector.broadcast %15 : vector<128x1xf32> to vector<128x128xf32>
    %18 = vector.broadcast %16 : vector<1x128xf32> to vector<128x128xf32>
    %19 = arith.mulf %17, %18 : vector<128x128xf32>
    %20 = arith.addf %14, %19 : vector<128x128xf32>
    %cst = arith.constant 0.000000e+00 : f32
    %21 = vector.broadcast %cst : f32 to vector<128x128xf32>
    %22 = arith.maximumf %20, %21 : vector<128x128xf32>
    %c0_7 = arith.constant 0 : index
    %c0_8 = arith.constant 0 : index
    %23 = vector.load %arg4[%c0_7, %c0_8] : memref<4x128xf32, #tpu.memory_space<vmem>>, vector<4x128xf32>
    %cst_9 = arith.constant dense<0.000000e+00> : vector<4x128xf32>
    %24 = tpu.matmul %23, %22, %cst_9 {dimension_numbers = #tpu.dot_dimension_numbers<[1], [0], [0], [1], [0, 0, 1, 1], [], []>} : vector<4x128xf32>, vector<128x128xf32>, vector<4x128xf32> -> vector<4x128xf32>
    %c0_10 = arith.constant 0 : index
    %c0_11 = arith.constant 0 : index
    %25 = vector.load %arg5[%c0_10, %c0_11] : memref<4x1xf32, #tpu.memory_space<vmem>>, vector<4x1xf32>
    %26 = vector.broadcast %25 : vector<4x1xf32> to vector<4x128xf32>
    %27 = arith.addf %24, %26 : vector<4x128xf32>
    %cst_12 = arith.constant dense<0xFF800000> : vector<128xf32>
    %28 = vector.multi_reduction <maximumf>, %27, %cst_12 [0] : vector<4x128xf32> to vector<128xf32>
    %29 = vector.shape_cast %28 : vector<128xf32> to vector<1x128xf32>
    %30 = vector.broadcast %29 : vector<1x128xf32> to vector<4x128xf32>
    %31 = arith.subf %27, %30 : vector<4x128xf32>
    %32 = math.exp %31 : vector<4x128xf32>
    %cst_13 = arith.constant dense<0.000000e+00> : vector<128xf32>
    %33 = vector.multi_reduction <add>, %32, %cst_13 [0] : vector<4x128xf32> to vector<128xf32>
    %34 = vector.shape_cast %33 : vector<128xf32> to vector<1x128xf32>
    %35 = vector.broadcast %34 : vector<1x128xf32> to vector<4x128xf32>
    %36 = arith.divf %32, %35 : vector<4x128xf32>
    %c0_14 = arith.constant 0 : index
    %c0_15 = arith.constant 0 : index
    %37 = vector.load %arg6[%c0_14, %c0_15] : memref<4x128xf32, #tpu.memory_space<vmem>>, vector<4x128xf32>
    tpu.vector_store %arg6[%c0_14, %c0_15], %36 {strides = array<i32>} : memref<4x128xf32, #tpu.memory_space<vmem>>, vector<4x128xf32>,
    return
  }
  func.func @transform_0(%arg0: i32) -> (i32, i32) {
    %c0_i32 = arith.constant 0 : i32
    %c0_i32_0 = arith.constant 0 : i32
    return %c0_i32, %arg0 : i32, i32
  }
  func.func @transform_1(%arg0: i32) -> (i32, i32) {
    %c0_i32 = arith.constant 0 : i32
    %c0_i32_0 = arith.constant 0 : i32
    %c0_i32_1 = arith.constant 0 : i32
    return %c0_i32, %c0_i32_0 : i32, i32
  }
  func.func @transform_2(%arg0: i32) -> (i32, i32) {
    %c0_i32 = arith.constant 0 : i32
    %c0_i32_0 = arith.constant 0 : i32
    %c0_i32_1 = arith.constant 0 : i32
    return %c0_i32, %c0_i32_0 : i32, i32
  }
  func.func @transform_3(%arg0: i32) -> (i32, i32) {
    %c0_i32 = arith.constant 0 : i32
    %c0_i32_0 = arith.constant 0 : i32
    %c0_i32_1 = arith.constant 0 : i32
    return %c0_i32, %c0_i32_0 : i32, i32
  }
  func.func @transform_4(%arg0: i32) -> (i32, i32) {
    %c0_i32 = arith.constant 0 : i32
    %c0_i32_0 = arith.constant 0 : i32
    %c0_i32_1 = arith.constant 0 : i32
    return %c0_i32, %c0_i32_0 : i32, i32
  }
  func.func @transform_5(%arg0: i32) -> (i32, i32) {
    %c0_i32 = arith.constant 0 : i32
    %c0_i32_0 = arith.constant 0 : i32
    return %c0_i32, %arg0 : i32, i32
  }
}

</mosaic_0001>

<bundles_post_ra>
// kernel: tpu_custom_call.1
= control target key start
LH: loop header
LB: loop body
LE: loop exit
PB: predicated region body
PF: predicated region fallthrough
CT: control target
= control target key end

     0   :  { %10 = vsyncpa [#allocation3], 0  ;;  %s1500_s0 = inlined_call_operand.vmem [shape: f32[3,256], index: 0, kind: input, shape index: {}]   ;;  %s1501_s1 = inlined_call_operand.vmem [shape: f32[128,3], index: 1, kind: input, shape index: {}]   ;;  %s1502_s2 = inlined_call_operand.vmem [shape: f32[128,1], index: 2, kind: input, shape index: {}]   ;;  %s1503_s3 = inlined_call_operand.vmem [shape: f32[4,128], index: 3, kind: input, shape index: {}]   ;;  %s1504_s4 = inlined_call_operand.vmem [shape: f32[4,1], index: 4, kind: input, shape index: {}]   ;;  %s1505_s5 = inlined_call_operand.hbm [shape: f32[4,256], index: 5, kind: output, shape index: {}]  }
   0x1   :  { %12 = vsyncpa [#allocation3 + $0x1], 0  ;;  %s1108_s18 = smov 0   ;;  %s1110_s19 = smov 0  }
   0x2   :  { %s1112_s20 = smov 0   ;;  %s1114_s21 = smov 0  }
   0x3 LB: > { %s1129_s22 = sadd.s32 4294967295, %s1069_s21   ;;  %s836_s23 = sadd.s32 4294967294, %s1069_s21   ;;  %s1069_s21 = sphi %s1114_s21, %s1511_s21   ;;  %s1065_s20 = sphi %s1112_s20, %s1510_s20   ;;  %s1061_s19 = sphi %s1110_s19, %s1509_s19   ;;  %s1057_s18 = sphi %s1108_s18, %s1508_s18  }
   0x4   : > { %s1133_s24 = sadd.s32 1, %s1069_s21   ;;  %s135_s25 = sadd.s32 1, %s1065_s20 }
   0x5   : > { %s132_s26 = ssub.s32 %s1069_s21, %s1133_s24  ;;  %p145_p0 = scmp.ne.s32.totalorder %s1065_s20, %s1061_s19 }
   0x6   : > { %p133_p1 = scmp.eq.s32.totalorder %s132_s26, 0  ;;  %p146_p2 = scmp.eq.s32.totalorder %s1129_s22, 1 }
   0x7   : > { %p151_p3 = scmp.ne.s32.totalorder %s1061_s19, %s1057_s18  ;;  %p152_p4 = scmp.eq.s32.totalorder %s836_s23, 1 }
   0x8   : > { %s1144_s27 = scalar_select %p133_p1, %s1065_s20, %s135_s25  }
   0x9   : > { %p1146_p5 = por %p146_p2, %p145_p0  ;;  %p1150_p6 = por %p152_p4, %p151_p3 }
   0xa   : > { %p839_p7 = scmp.ge.s32.totalorder %s1069_s21, 1  ;;  %p189_p8 = scmp.lt.s32.totalorder %s1069_s21, 3 }
   0xc   : > { %p190_p9 = pnand %p839_p7, %p189_p8 }
   0xd   : > { %v1159_v0 = vld [vmem:[%s1501_s1] sm:$0xff] (!%p190_p9)  ;;  %v1071_v2 = vmov (!%p190_p9), 0   ;;  %v238_v3 = vld [vmem:[%s1501_s1 + $0x8] sm:$0xff] (!%p190_p9)  ;;  %v240_v5 = vld [vmem:[%s1501_s1 + $0x18] sm:$0xff] (!%p190_p9)  ;;  %v1072_v6 = vmov (!%p190_p9), 1   ;;  %v1073_v11 = vmov (!%p190_p9), 2   ;;  %v333_v57 = vlaneseq (!%p190_p9) }
   0xe   : > { %193 = sbr.rel (%p190_p9) target bundleno = 618 (0x26a), region = 40  ;;  %v221_v1 = vld [vmem:[%s1502_s2] sm:$0xff] (!%p190_p9)  ;;  %968 = vset.pattern.permute.xlu1 (!%p190_p9), %v1071_v2  ;;  %967 = vset.pattern.permute.xlu0 (!%p190_p9), %v1071_v2  ;;  %v222_v4 = vld [vmem:[%s1502_s2 + $0x8] sm:$0xff] (!%p190_p9)  ;;  %v223_v7 = vld [vmem:[%s1502_s2 + $0x10] sm:$0xff] (!%p190_p9)  ;;  %v1074_v27 = vmov (!%p190_p9), 0.0|0.0   ;;  %p216_p10 = scmp.lt.s32.totalorder (!%p190_p9), %s1129_s22, 1 }
   0xf   : > { %255 = vperm.xlu0 (!%p190_p9), %967, %v1159_v0   ;;  %355 = vperm.xlu1 (!%p190_p9), %968, %v221_v1   ;;  %v239_v8 = vld [vmem:[%s1501_s1 + $0x10] sm:$0xff] (!%p190_p9)  ;;  %v242_v9 = vld [vmem:[%s1501_s1 + $0x28] sm:$0xff] (!%p190_p9)  ;;  %v225_v10 = vld [vmem:[%s1502_s2 + $0x20] sm:$0xff] (!%p190_p9)  ;;  %v334_v60 = vshrl.u32 (!%p190_p9), %v333_v57, 7  ;;  %vm1075_vm0 = vmmov (!%p190_p9), 0   ;;  %vm742_vm1 = vcmask (!%p190_p9), 1043456  }
  0x10   : > { %v1195_v12 = vld [vmem:[%s1501_s1 + $0x38] sm:$0xff] (!%p190_p9)  ;;  %v227_v13 = vld [vmem:[%s1502_s2 + $0x30] sm:$0xff] (!%p190_p9)  ;;  %v1208_v15 = vld [vmem:[%s1501_s1 + $0x48] sm:$0xff] (!%p190_p9)  ;;  %898 = vmatprep.subr.bf16.mxu0 (!%p190_p9), %v1074_v27  ;;  %s213_s14 = sand.u32 (!%p190_p9), 1, %s1061_s19   ;;  %s843_s16 = sshll.u32 (!%p190_p9), %s1129_s22, 6 }
  0x11   : > { %v224_v14 = vld [vmem:[%s1502_s2 + $0x18] sm:$0xff] (!%p190_p9)  ;;  %v229_v16 = vld [vmem:[%s1502_s2 + $0x40] sm:$0xff] (!%p190_p9)  ;;  %v231_v19 = vld [vmem:[%s1502_s2 + $0x50] sm:$0xff] (!%p190_p9)  ;;  %v335_v62 = vsub.s32 (!%p190_p9), 0, %v334_v60  ;;  %s840_s15 = sshll.u32 (!%p190_p9), %s213_s14, 2 }
  0x12   : > { %v241_v17 = vld [vmem:[%s1501_s1 + $0x20] sm:$0xff] (!%p190_p9)  ;;  %v1222_v18 = vld [vmem:[%s1501_s1 + $0x58] sm:$0xff] (!%p190_p9)  ;;  %v1232_v20 = vld [vmem:[%s1501_s1 + $0x68] sm:$0xff] (!%p190_p9)  ;;  %s215_s17 = scalar_lea.vmem (!%p190_p9), [#allocation2], %s840_s15 }
  0x13   : > { %260 = vperm.xlu0 (!%p190_p9), %967, %v238_v3   ;;  %360 = vperm.xlu1 (!%p190_p9), %968, %v222_v4   ;;  %v233_v21 = vld [vmem:[%s1502_s2 + $0x60] sm:$0xff] (!%p190_p9)  ;;  %v226_v22 = vld [vmem:[%s1502_s2 + $0x28] sm:$0xff] (!%p190_p9)  ;;  %v1245_v23 = vld [vmem:[%s1501_s1 + $0x78] sm:$0xff] (!%p190_p9)  ;;  %s777_s23 = sshll.u32 (!%p190_p9), %s215_s17, 4  ;;  %s1460_s23 = int_to_ptr.vmem [resolvable:$true] %s777_s23 }
  0x14   : > { %v235_v24 = vld [vmem:[%s1502_s2 + $0x70] sm:$0xff] (!%p190_p9)  ;;  %v228_v26 = vld [vmem:[%s1502_s2 + $0x38] sm:$0xff] (!%p190_p9)  ;;  %v245_v28 = vld [vmem:[%s1501_s1 + $0x40] sm:$0xff] (!%p190_p9)  ;;  %s1007_s7 = scalar_lea.vmem (!%p190_p9), %s1460_s23, 64 }
  0x15   : > { %v243_v25 = vld [vmem:[%s1501_s1 + $0x30] sm:$0xff]  ;;  %v249_v30 = vld [vmem:[%s1501_s1 + $0x60] sm:$0xff]  ;;  %v230_v32 = vld [vmem:[%s1502_s2 + $0x48] sm:$0xff]  ;;  %s217_s30 = scalar_select %p216_p10, %s1129_s22, 1 }
  0x16   : > { %v247_v29 = vld [vmem:[%s1501_s1 + $0x50] sm:$0xff]  ;;  %v232_v33 = vld [vmem:[%s1502_s2 + $0x58] sm:$0xff]  ;;  %v234_v43 = vld [vmem:[%s1502_s2 + $0x68] sm:$0xff]  ;;  %p1008_p11 = scmp.ne.s32.totalorder %s1460_s23, %s1007_s7  ;;  %s1077_s22 = smov [#allocation2]  }
  0x17   : > { %270 = vperm.xlu0 %967, %v240_v5   ;;  %969 = vset.pattern.permute.xlu1 %v1072_v6  ;;  %v1280_v31 = vld [vmem:[%s1501_s1 + $0x70] sm:$0xff]  ;;  %v236_v55 = vld [vmem:[%s1502_s2 + $0x78] sm:$0xff]  ;;  %s841_s6 = sshll.u32 %s217_s30, 2  ;;  %s1458_s30 = scalar_lea.hbm %s1505_s5, %s843_s16 }
  0x18   : > { %454 = vperm.xlu1 %969, %v238_v3   ;;  %s219_s9 = scalar_lea.vmem %s1500_s0, %s841_s6  ;;  %s764_s6 = scalar_lea.sflag [#allocation3], %s213_s14 }
  0x19   : > { %v220_v1 = vld [vmem:[%s219_s9] sm:$0x7]  ;;  %p1009_p12 = pnand %p1008_p11, %p1146_p5  ;;  %s1011_s8 = sshll.u32 %s1077_s22, 4  ;;  %s1012_s8 = int_to_ptr.vmem [resolvable:$false] %s1011_s8 }
  0x1a   : > { %v1362_v4 = vrot.slane %v220_v1, %v335_v62  ;;  %s1013_s9 = scalar_lea.vmem %s1012_s8, 128  ;;  %p1014_p0 = scmp.lt.s32.totalorder %s1460_s23, %s1012_s8 }
  0x1b   : > { %365 = vperm.xlu0 %967, %v223_v7   ;;  %v615_v7 = vsub.s32 2, %v334_v60  ;;  %p1010_p13 = pneg %p1009_p12  ;;  %p1015_p1 = scmp.lt.s32.totalorder %s1013_s9, %s1007_s7 }
  0x1c   : > { %970 = vset.pattern.permute.xlu1 %v1071_v2 }
  0x1d   : > { %265 = vperm.xlu1 %970, %v239_v8   ;;  %p1016_p2 = por %p1015_p1, %p1014_p0 }
  0x1f   : > { %280 = vperm.xlu0 %967, %v242_v9   ;;  %p1017_p3 = pnand %p1016_p2, %p1010_p13 }
  0x21   : > { %971 = vset.pattern.permute.xlu1 %v1073_v11 }
  0x22   : > { %550 = vperm.xlu1 %971, %v1159_v0  }
  0x23   : > { %375 = vperm.xlu0 %967, %v225_v10  }
  0x26   : > { %554 = vperm.xlu1 %971, %v238_v3   ;;  %v515_v3 = vsub.s32 1, %v334_v60 }
  0x27   : > { %290 = vperm.xlu0 %967, %v1195_v12  }
  0x2a   : > { %972 = vset.pattern.permute.xlu1 %v1071_v2 }
  0x2b   : > { %385 = vperm.xlu0 %967, %v227_v13   ;;  %370 = vperm.xlu1 %972, %v224_v14   ;;  %v1373_v13 = vrot.slane %v220_v1, %v615_v7 }
  0x2f   : > { %300 = vperm.xlu0 %967, %v1208_v15   ;;  %973 = vset.pattern.permute.xlu1 %v1072_v6 }
  0x30   : > { %462 = vperm.xlu1 %973, %v240_v5  }
  0x33   : > { %395 = vperm.xlu0 %967, %v229_v16  }
  0x34   : > { %974 = vset.pattern.permute.xlu1 %v1071_v2 }
  0x35   : > { %275 = vperm.xlu1 %974, %v241_v17  }
  0x37   : > { %310 = vperm.xlu0 %967, %v1222_v18  }
  0x39   : > { %975 = vset.pattern.permute.xlu1 %v1073_v11 }
  0x3a   : > { %558 = vperm.xlu1 %975, %v239_v8  }
  0x3b   : > { %405 = vperm.xlu0 %967, %v231_v19  }
  0x3e   : > { %562 = vperm.xlu1 %975, %v240_v5  }
  0x3f   : > { %320 = vperm.xlu0 %967, %v1232_v20  }
  0x42   : > { %976 = vset.pattern.permute.xlu1 %v1071_v2 }
  0x43   : > { %415 = vperm.xlu0 %967, %v233_v21   ;;  %380 = vperm.xlu1 %976, %v226_v22  }
  0x47   : > { %330 = vperm.xlu0 %967, %v1245_v23   ;;  %977 = vset.pattern.permute.xlu1 %v1072_v6 }
  0x48   : > { %470 = vperm.xlu1 %977, %v242_v9  }
  0x4b   : > { %425 = vperm.xlu0 %967, %v235_v24   ;;  %v666_v24 = vld [vmem:[%s1504_s4] sm:$0xf] }
  0x4c   : > { %978 = vset.pattern.permute.xlu1 %v1071_v2 }
  0x4d   : > { %285 = vperm.xlu1 %978, %v243_v25  }
  0x4f   : > { %996 = vset.pattern.permute.xlu0 %v1072_v6 }
  0x50   : > { %450 = vperm.xlu0 %996, %v1159_v0  }
  0x51   : > { %979 = vset.pattern.permute.xlu1 %v1073_v11 }
  0x52   : > { %566 = vperm.xlu1 %979, %v241_v17  }
  0x54   : > { %458 = vperm.xlu0 %996, %v239_v8  }
  0x56   : > { %570 = vperm.xlu1 %979, %v242_v9  }
  0x58   : > { %466 = vperm.xlu0 %996, %v241_v17  }
  0x5a   : > { %980 = vset.pattern.permute.xlu1 %v1071_v2 }
  0x5b   : > { %390 = vperm.xlu1 %980, %v228_v26  }
  0x5c   : > { %474 = vperm.xlu0 %996, %v243_v25  }
  0x5f   : > { %981 = vset.pattern.permute.xlu1 %v1072_v6 }
  0x60   : > { %478 = vperm.xlu1 %981, %v1195_v12   ;;  %482 = vperm.xlu0 %996, %v245_v28  }
  0x64   : > { %982 = vset.pattern.permute.xlu1 %v1071_v2  ;;  %490 = vperm.xlu0 %996, %v247_v29  }
  0x65   : > { %295 = vperm.xlu1 %982, %v245_v28  }
  0x68   : > { %498 = vperm.xlu0 %996, %v249_v30  }
  0x69   : > { %983 = vset.pattern.permute.xlu1 %v1073_v11 }
  0x6a   : > { %574 = vperm.xlu1 %983, %v243_v25  }
  0x6c   : > { %506 = vperm.xlu0 %996, %v1280_v31  }
  0x6e   : > { %578 = vperm.xlu1 %983, %v1195_v12  }
  0x70   : > { %1000 = vset.pattern.permute.xlu0 %v1073_v11 }
  0x71   : > { %610 = vperm.xlu0 %1000, %v1245_v23  }
  0x72   : > { %984 = vset.pattern.permute.xlu1 %v1071_v2 }
  0x73   : > { %400 = vperm.xlu1 %984, %v230_v32  }
  0x75   : > { %1002 = vset.pattern.permute.xlu0 %v1071_v2 }
  0x77   : > { %985 = vset.pattern.permute.xlu1 %v1072_v6 }
  0x78   : > { %486 = vperm.xlu1 %985, %v1208_v15  }
  0x7c   : > { %986 = vset.pattern.permute.xlu1 %v1071_v2 }
  0x7d   : > { %305 = vperm.xlu1 %986, %v247_v29  }
  0x81   : > { %987 = vset.pattern.permute.xlu1 %v1073_v11 }
  0x82   : > { %582 = vperm.xlu1 %987, %v245_v28  }
  0x86   : > { %586 = vperm.xlu1 %987, %v1208_v15  }
  0x8a   : > { %988 = vset.pattern.permute.xlu1 %v1071_v2 }
  0x8b   : > { %410 = vperm.xlu1 %988, %v232_v33  }
  0x8e   : > { %v1300_v34 = vpop.permute.xlu0 %255  ;;  %v1302_v35 = vpop.permute.xlu1 %355 }
  0x8f   : > { %989 = vset.pattern.permute.xlu1 %v1072_v6 }
  0x90   : > { %494 = vperm.xlu1 %989, %v1222_v18  }
  0x92   : > { %v261_v36 = vpop.permute.xlu0 %260  ;;  %v1306_v37 = vpop.permute.xlu1 %360 }
  0x93   : > { %v338_v9 = vmul.f32 %v1362_v4, %v261_v36 }
  0x94   : > { %990 = vset.pattern.permute.xlu1 %v1071_v2 }
  0x95   : > { %315 = vperm.xlu1 %990, %v249_v30   ;;  %v434_v14 = vadd.f32 %v1306_v37, %v338_v9 }
  0x96   : > { %v1309_v38 = vpop.permute.xlu0 %270 }
  0x97   : > { %v455_v39 = vpop.permute.xlu1 %454  ;;  %v340_v16 = vmul.f32 %v1362_v4, %v1309_v38 }
  0x99   : > { %991 = vset.pattern.permute.xlu1 %v1073_v11 }
  0x9a   : > { %590 = vperm.xlu1 %991, %v247_v29   ;;  %v1312_v40 = vpop.permute.xlu0 %365 }
  0x9c   : > { %v1314_v41 = vpop.permute.xlu1 %265 }
  0x9d   : > { %v339_v22 = vmul.f32 %v1362_v4, %v1314_v41 }
  0x9e   : > { %594 = vperm.xlu1 %991, %v1222_v18   ;;  %v1317_v42 = vpop.permute.xlu0 %280  ;;  %v1076_v18 = vmov 0.0  }
  0x9f   : > { %895 = vmatprep.mubr.msk.f32.mxu0 %vm1075_vm0, %v1076_v18  ;;  %v435_v36 = vadd.f32 %v1312_v40, %v339_v22 }
  0xa1   : > { %v1322_v44 = vpop.permute.xlu1 %550 }
  0xa2   : > { %992 = vset.pattern.permute.xlu1 %v1071_v2  ;;  %v1325_v45 = vpop.permute.xlu0 %375 }
  0xa3   : > { %420 = vperm.xlu1 %992, %v234_v43  }
  0xa5   : > { %v555_v46 = vpop.permute.xlu1 %554 }
  0xa6   : > { %v1327_v47 = vpop.permute.xlu0 %290  ;;  %v618_v17 = vmul.f32 %v1373_v13, %v555_v46 }
  0xa7   : > { %993 = vset.pattern.permute.xlu1 %v1072_v6 }
  0xa8   : > { %502 = vperm.xlu1 %993, %v1232_v20  }
  0xaa   : > { %v371_v48 = vpop.permute.xlu1 %370  ;;  %v1331_v49 = vpop.permute.xlu0 %385 }
  0xab   : > { %v436_v26 = vadd.f32 %v371_v48, %v340_v16 }
  0xac   : > { %994 = vset.pattern.permute.xlu1 %v1071_v2 }
  0xad   : > { %325 = vperm.xlu1 %994, %v1280_v31  }
  0xae   : > { %v1335_v50 = vpop.permute.xlu0 %300 }
  0xaf   : > { %v463_v51 = vpop.permute.xlu1 %462 }
  0xb1   : > { %995 = vset.pattern.permute.xlu1 %v1073_v11 }
  0xb2   : > { %598 = vperm.xlu1 %995, %v249_v30   ;;  %v1338_v52 = vpop.permute.xlu0 %395  ;;  %v342_v30 = vmul.f32 %v1362_v4, %v1317_v42 }
  0xb4   : > { %v276_v53 = vpop.permute.xlu1 %275 }
  0xb6   : > { %602 = vperm.xlu1 %995, %v1232_v20   ;;  %v1342_v54 = vpop.permute.xlu0 %310 }
  0xb9   : > { %v559_v56 = vpop.permute.xlu1 %558 }
  0xba   : > { %997 = vset.pattern.permute.xlu1 %v1071_v2  ;;  %v1349_v58 = vpop.permute.xlu0 %405  ;;  %v619_v43 = vmul.f32 %v1373_v13, %v559_v56 }
  0xbb   : > { %430 = vperm.xlu1 %997, %v236_v55  }
  0xbd   : > { %v563_v59 = vpop.permute.xlu1 %562 }
  0xbe   : > { %v1351_v61 = vpop.permute.xlu0 %320  ;;  %v620_v28 = vmul.f32 %v1373_v13, %v563_v59 }
  0xbf   : > { %998 = vset.pattern.permute.xlu1 %v1072_v6  ;;  %v1366_v6 = vrot.slane %v220_v1, %v515_v3 }
  0xc0   : > { %510 = vperm.xlu1 %998, %v1245_v23  }
  0xc1   : > { %v518_v12 = vmul.f32 %v1366_v6, %v455_v39  ;;  %v520_v19 = vmul.f32 %v1366_v6, %v463_v51 }
  0xc2   : > { %v381_v63 = vpop.permute.xlu1 %380  ;;  %v1358_v0 = vpop.permute.xlu0 %415 }
  0xc3   : > { %v536_v33 = vadd.f32 %v520_v19, %v436_v26  ;;  %v438_v48 = vadd.f32 %v381_v63, %v342_v30  ;;  %v344_v19 = vmul.f32 %v1362_v4, %v1327_v47 }
  0xc4   : > { %999 = vset.pattern.permute.xlu1 %v1073_v11  ;;  %v337_v11 = vmul.f32 %v1362_v4, %v1300_v34  ;;  %v341_v34 = vmul.f32 %v1362_v4, %v276_v53 }
  0xc5   : > { %606 = vperm.xlu1 %999, %v1280_v31   ;;  %v617_v31 = vmul.f32 %v1373_v13, %v1322_v44  ;;  %v636_v46 = vadd.f32 %v620_v28, %v536_v33 }
  0xc6   : > { %v1364_v5 = vpop.permute.xlu0 %330  ;;  %v433_v21 = vadd.f32 %v1302_v35, %v337_v11  ;;  %v437_v53 = vadd.f32 %v1325_v45, %v341_v34 }
  0xc7   : > { %v471_v8 = vpop.permute.xlu1 %470  ;;  %v652_v1 = vmax.f32 %v636_v46, 0.0 }
  0xc8   : > { %v522_v37 = vmul.f32 %v1366_v6, %v471_v8 }
  0xc9   : > { %1001 = vset.pattern.permute.xlu1 %v1071_v2  ;;  %v534_v2 = vadd.f32 %v518_v12, %v434_v14 }
  0xca   : > { %v1370_v10 = vpop.permute.xlu0 %425  ;;  %669 = vperm.xlu1 %1001, %v666_v24   ;;  %v538_v59 = vadd.f32 %v522_v37, %v438_v48 }
  0xcb   : > { %v634_v25 = vadd.f32 %v618_v17, %v534_v2 }
  0xcc   : > { %v286_v15 = vpop.permute.xlu1 %285 }
  0xcd   : > { %v650_v41 = vmax.f32 %v634_v25, 0.0  ;;  %v343_v2 = vmul.f32 %v1362_v4, %v286_v15 }
  0xcf   : > { %v451_v20 = vpop.permute.xlu0 %450  ;;  %v439_v22 = vadd.f32 %v1331_v49, %v343_v2 }
  0xd0   : > { %v517_v23 = vmul.f32 %v1366_v6, %v451_v20 }
  0xd1   : > { %v567_v29 = vpop.permute.xlu1 %566 }
  0xd2   : > { %v533_v32 = vadd.f32 %v517_v23, %v433_v21  ;;  %v621_v3 = vmul.f32 %v1373_v13, %v567_v29 }
  0xd3   : > { %v459_v35 = vpop.permute.xlu0 %458 }
  0xd4   : > { %v519_v38 = vmul.f32 %v1366_v6, %v459_v35  ;;  %v633_v39 = vadd.f32 %v617_v31, %v533_v32 }
  0xd5   : > { %v571_v42 = vpop.permute.xlu1 %570 }
  0xd6   : > { %v535_v51 = vadd.f32 %v519_v38, %v435_v36  ;;  %v622_v44 = vmul.f32 %v1373_v13, %v571_v42  ;;  %v649_v55 = vmax.f32 %v633_v39, 0.0 }
  0xd7   : > { %v467_v57 = vpop.permute.xlu0 %466 }
  0xd8   : > { %v635_v40 = vadd.f32 %v619_v43, %v535_v51  ;;  %v521_v60 = vmul.f32 %v1366_v6, %v467_v57  ;;  %v899_v62 = vpack.c.bf16 %v650_v41, %v649_v55  ;;  %v638_v56 = vadd.f32 %v622_v44, %v538_v59 }
  0xd9   : > { %v346_v43 = vmul.f32 %v1362_v4, %v1335_v50 }
  0xda   : > { %v651_v7 = vmax.f32 %v635_v40, 0.0  ;;  %v537_v8 = vadd.f32 %v521_v60, %v437_v53  ;;  %v391_v9 = vpop.permute.xlu1 %390  ;;  %900 = vmatpush3.bf16.msra.mxu0 %v899_v62  ;;  %v654_v11 = vmax.f32 %v638_v56, 0.0 }
  0xdb   : > { %901 = vmatprep.subr.bf16.mxu0 %v1074_v27  ;;  %v475_v18 = vpop.permute.xlu0 %474  ;;  %v440_v25 = vadd.f32 %v391_v9, %v344_v19 }
  0xdc   : > { %v637_v63 = vadd.f32 %v621_v3, %v537_v8  ;;  %v902_v12 = vpack.c.bf16 %v652_v1, %v651_v7  ;;  %v523_v20 = vmul.f32 %v1366_v6, %v475_v18 }
  0xde   : > { %v653_v45 = vmax.f32 %v637_v63, 0.0  ;;  %903 = vmatpush3.bf16.msra.mxu0 %v902_v12  ;;  %v539_v26 = vadd.f32 %v523_v20, %v439_v22  ;;  %v348_v63 = vmul.f32 %v1362_v4, %v1342_v54 }
  0xdf   : > { %v479_v14 = vpop.permute.xlu1 %478  ;;  %904 = vmatprep.subr.bf16.mxu0 %v1074_v27  ;;  %v483_v37 = vpop.permute.xlu0 %482 }
  0xe0   : > { %v905_v16 = vpack.c.bf16 %v654_v11, %v653_v45  ;;  %v524_v23 = vmul.f32 %v1366_v6, %v479_v14  ;;  %v525_v39 = vmul.f32 %v1366_v6, %v483_v37 }
  0xe2   : > { %906 = vmatpush3.bf16.msra.mxu0 %v905_v16  ;;  %v540_v29 = vadd.f32 %v524_v23, %v440_v25 }
  0xe3   : > { %907 = vmatprep.subr.bf16.mxu0 %v1074_v27  ;;  %v491_v7 = vpop.permute.xlu0 %490 }
  0xe4   : > { %v296_v17 = vpop.permute.xlu1 %295  ;;  %v527_v8 = vmul.f32 %v1366_v6, %v491_v7 }
  0xe5   : > { %v345_v49 = vmul.f32 %v1362_v4, %v296_v17 }
  0xe7   : > { %v441_v38 = vadd.f32 %v1338_v52, %v345_v49  ;;  %v499_v25 = vpop.permute.xlu0 %498 }
  0xe9   : > { %v575_v21 = vpop.permute.xlu1 %574  ;;  %v541_v48 = vadd.f32 %v525_v39, %v441_v38 }
  0xea   : > { %v623_v24 = vmul.f32 %v1373_v13, %v575_v21 }
  0xeb   : > { %v507_v37 = vpop.permute.xlu0 %506 }
  0xec   : > { %v639_v30 = vadd.f32 %v623_v24, %v539_v26 }
  0xed   : > { %v579_v28 = vpop.permute.xlu1 %578 }
  0xee   : > { %v624_v31 = vmul.f32 %v1373_v13, %v579_v28  ;;  %v655_v32 = vmax.f32 %v639_v30, 0.0  ;;  %v529_v28 = vmul.f32 %v1366_v6, %v499_v25  ;;  %v350_v30 = vmul.f32 %v1362_v4, %v1351_v61 }
  0xef   : > { %v352_v61 = vmul.f32 %v1362_v4, %v1364_v5 }
  0xf0   : > { %v640_v15 = vadd.f32 %v624_v31, %v540_v29 }
  0xf2   : > { %v656_v33 = vmax.f32 %v640_v15, 0.0  ;;  %v401_v47 = vpop.permute.xlu1 %400 }
  0xf3   : > { %v442_v51 = vadd.f32 %v401_v47, %v346_v43 }
  0xf4   : > { %v908_v34 = vpack.c.bf16 %v656_v33, %v655_v32 }
  0xf6   : > { %909 = vmatpush3.bf16.msra.mxu0 %v908_v34 }
  0xf7   : > { %v487_v35 = vpop.permute.xlu1 %486  ;;  %910 = vmatprep.subr.bf16.mxu0 %v1074_v27 }
  0xf8   : > { %v526_v46 = vmul.f32 %v1366_v6, %v487_v35 }
  0xfa   : > { %v542_v55 = vadd.f32 %v526_v46, %v442_v51  ;;  %v611_v46 = vpop.permute.xlu0 %610 }
  0xfc   : > { %v306_v36 = vpop.permute.xlu1 %305 }
  0xfd   : > { %v347_v50 = vmul.f32 %v1362_v4, %v306_v36 }
  0xff   : > { %v443_v56 = vadd.f32 %v1349_v58, %v347_v50 }
 0x101   : > { %v583_v41 = vpop.permute.xlu1 %582  ;;  %v543_v45 = vadd.f32 %v527_v8, %v443_v56 }
 0x102   : > { %v625_v42 = vmul.f32 %v1373_v13, %v583_v41 }
 0x104   : > { %v641_v53 = vadd.f32 %v625_v42, %v541_v48 }
 0x105   : > { %v587_v44 = vpop.permute.xlu1 %586 }
 0x106   : > { %v626_v57 = vmul.f32 %v1373_v13, %v587_v44  ;;  %v657_v40 = vmax.f32 %v641_v53, 0.0 }
 0x108   : > { %v642_v59 = vadd.f32 %v626_v57, %v542_v55  ;;  %v632_v55 = vmul.f32 %v1373_v13, %v611_v46  ;;  %v531_v57 = vmul.f32 %v1366_v6, %v507_v37 }
 0x10a   : > { %v658_v52 = vmax.f32 %v642_v59, 0.0  ;;  %v411_v60 = vpop.permute.xlu1 %410 }
 0x10b   : > { %v444_v14 = vadd.f32 %v411_v60, %v348_v63 }
 0x10c   : > { %v911_v62 = vpack.c.bf16 %v658_v52, %v657_v40 }
 0x10e   : > { %912 = vmatpush3.bf16.msra.mxu0 %v911_v62 }
 0x10f   : > { %v495_v1 = vpop.permute.xlu1 %494  ;;  %913 = vmatprep.subr.bf16.mxu0 %v1074_v27 }
 0x110   : > { %v528_v12 = vmul.f32 %v1366_v6, %v495_v1 }
 0x112   : > { %v544_v17 = vadd.f32 %v528_v12, %v444_v14 }
 0x114   : > { %v316_v3 = vpop.permute.xlu1 %315 }
 0x115   : > { %v349_v54 = vmul.f32 %v1362_v4, %v316_v3 }
 0x117   : > { %v445_v26 = vadd.f32 %v1358_v0, %v349_v54 }
 0x119   : > { %v591_v9 = vpop.permute.xlu1 %590  ;;  %v545_v32 = vadd.f32 %v529_v28, %v445_v26 }
 0x11a   : > { %v627_v11 = vmul.f32 %v1373_v13, %v591_v9 }
 0x11c   : > { %v643_v18 = vadd.f32 %v627_v11, %v543_v45 }
 0x11d   : > { %v595_v16 = vpop.permute.xlu1 %594 }
 0x11e   : > { %v628_v2 = vmul.f32 %v1373_v13, %v595_v16  ;;  %v659_v20 = vmax.f32 %v643_v18, 0.0 }
 0x120   : > { %v644_v19 = vadd.f32 %v628_v2, %v544_v17 }
 0x122   : > { %v660_v58 = vmax.f32 %v644_v19, 0.0  ;;  %v421_v21 = vpop.permute.xlu1 %420 }
 0x123   : > { %v446_v33 = vadd.f32 %v421_v21, %v350_v30 }
 0x124   : > { %v914_v22 = vpack.c.bf16 %v660_v58, %v659_v20 }
 0x126   : > { %915 = vmatpush3.bf16.msra.mxu0 %v914_v22 }
 0x127   : > { %v503_v23 = vpop.permute.xlu1 %502  ;;  %916 = vmatprep.subr.bf16.mxu0 %v1074_v27 }
 0x128   : > { %v530_v31 = vmul.f32 %v1366_v6, %v503_v23 }
 0x12a   : > { %v546_v34 = vadd.f32 %v530_v31, %v446_v33 }
 0x12c   : > { %v326_v24 = vpop.permute.xlu1 %325 }
 0x12d   : > { %v351_v43 = vmul.f32 %v1362_v4, %v326_v24 }
 0x12f   : > { %v447_v44 = vadd.f32 %v1370_v10, %v351_v43 }
 0x131   : > { %v599_v29 = vpop.permute.xlu1 %598  ;;  %v547_v52 = vadd.f32 %v531_v57, %v447_v44 }
 0x132   : > { %v629_v15 = vmul.f32 %v1373_v13, %v599_v29 }
 0x134   : > { %v645_v35 = vadd.f32 %v629_v15, %v545_v32 }
 0x135   : > { %v603_v47 = vpop.permute.xlu1 %602 }
 0x136   : > { %v630_v49 = vmul.f32 %v1373_v13, %v603_v47  ;;  %v661_v0 = vmax.f32 %v645_v35, 0.0 }
 0x138   : > { %v646_v36 = vadd.f32 %v630_v49, %v546_v34 }
 0x13a   : > { %v662_v38 = vmax.f32 %v646_v36, 0.0  ;;  %v431_v39 = vpop.permute.xlu1 %430 }
 0x13b   : > { %v448_v48 = vadd.f32 %v431_v39, %v352_v61 }
 0x13c   : > { %v917_v41 = vpack.c.bf16 %v662_v38, %v661_v0 }
 0x13e   : > { %918 = vmatpush3.bf16.msra.mxu0 %v917_v41 }
 0x13f   : > { %v511_v42 = vpop.permute.xlu1 %510  ;;  %919 = vmatprep.subr.bf16.mxu0 %v1074_v27  ;;  %v665_v27 = vld [vmem:[%s1503_s3] sm:$0xf] }
 0x140   : > { %v532_v51 = vmul.f32 %v1366_v6, %v511_v42 }
 0x142   : > { %v548_v53 = vadd.f32 %v532_v51, %v448_v48 }
 0x144   : > { %v607_v59 = vpop.permute.xlu1 %606  ;;  %v648_v40 = vadd.f32 %v632_v55, %v548_v53 }
 0x145   : > { %v631_v4 = vmul.f32 %v1373_v13, %v607_v59 }
 0x146   : > { %v664_v60 = vmax.f32 %v648_v40, 0.0 }
 0x147   : > { %v647_v5 = vadd.f32 %v631_v4, %v547_v52 }
 0x149   : > { %v663_v62 = vmax.f32 %v647_v5, 0.0  ;;  %v670_v10 = vpop.permute.xlu1 %669 }
 0x14b   : > { %v920_v1 = vpack.c.bf16 %v664_v60, %v663_v62 }
 0x14d   : > { %921 = vmatpush3.bf16.msra.mxu0 %v920_v1 }
 0x150   : > { %896 = vmatmul.mubr.f32.vlgmr.msra.gmra.mrb[0].mxu0 %v665_v27 }
 0x223   : > { %v738_v50 = vpop.f32.mrb[0].mxu0 }
 0x224   : > { %v739_v3 = vadd.f32 %v738_v50, %v670_v10  ;;  %v897_v6 = vpop.f32.mrb[1].mxu0 }
 0x226   : > { %v743_v7 = vsel %vm742_vm1, %v739_v3, -inf }
 0x227   : > { %v744_v56 = vrot.slane %v743_v7, 4 }
 0x229   : > { %v745_v8 = vmax.f32 %v743_v7, %v744_v56 }
 0x22b   : > { %v746_v13 = vrot.slane %v745_v8, 2 }
 0x22d   : > { %v747_v9 = vmax.f32 %v745_v8, %v746_v13 }
 0x22f   : > { %v748_v63 = vrot.slane %v747_v9, 1 }
 0x231   : > { %v749_v12 = vmax.f32 %v747_v9, %v748_v63 }
 0x233   : > { %v750_v11 = vsub.f32 %v739_v3, %v749_v12 }
 0x235   : > { %v751_v45 = vmul.f32 1.442695, %v750_v11 }
 0x237   : > { %1003 = vpow2.f32 %v751_v45 }
 0x241   : > { %v1004_v14 = vpop.eup %1003 }
 0x242   : > { %v753_v16 = vsel %vm742_vm1, %v1004_v14, 0.0 }
 0x243   : > { %v754_v17 = vrot.slane %v753_v16, 4 }
 0x245   : > { %v755_v18 = vadd.f32 %v754_v17, %v753_v16 }
 0x247   : > { %v756_v2 = vrot.slane %v755_v18, 2 }
 0x249   : > { %v757_v19 = vadd.f32 %v756_v2, %v755_v18 }
 0x24b   : > { %v758_v20 = vrot.slane %v757_v19, 1 }
 0x24d   : > { %v759_v58 = vadd.f32 %v758_v20, %v757_v19 }
 0x24f   : > { %1005 = vrcp.f32 %v759_v58 }
 0x259   : > { %v1006_v21 = vpop.eup %1005 }
 0x25a   : > { %v761_v22 = vmul.f32 %v1006_v21, %v1004_v14 }
 0x25c   : > { %762 = vst [vmem:[%s215_s17] sm:$0xf] %v761_v22 }
 0x25d   : > { %1020 = shalt.err (!%p1017_p3)
}
 0x25e   : > { %s1021_s10 = scalar_lea.hbm %s1458_s30, 64  ;;  %s1025_s13 = scalar_lea.hbm %s1505_s5, 128 }
 0x25f   : > { %p1022_p4 = scmp.ne.s32.totalorder %s1458_s30, %s1021_s10  ;;  %p1026_p9 = scmp.lt.u32.totalorder %s1458_s30, %s1505_s5 }
 0x260   : > { %p1027_p10 = scmp.lt.u32.totalorder %s1025_s13, %s1021_s10  ;;  %p1029_p12 = scmp.lt.u32.totalorder %s1021_s10, %s1458_s30 }
 0x261   : > { %p1023_p7 = pnand %p1022_p4, %p1146_p5 }
 0x262   : > { %p1028_p11 = por %p1027_p10, %p1026_p9 }
 0x263   : > { %p1024_p8 = pneg %p1023_p7 }
 0x264   : > { %p1030_p13 = por %p1029_p12, %p1028_p11 }
 0x266   : > { %p1031_p0 = pnand %p1030_p13, %p1024_p8 }
 0x268   : > { %1034 = shalt.err (!%p1031_p0)
}
 0x269   : > { %922 = dma.vmem_to_hbm [thread:$0]  (%p1146_p5), %s1460_s23, 64, %s1458_s30, %s764_s6  }
 0x26a PF: > { %p928_p1 = scmp.ge.s32.totalorder %s1069_s21, 2  ;;  %s789_s16 = sand.u32 1, %s1057_s18  }
 0x26b   : > { %s790_s17 = scalar_lea.sflag [#allocation3], %s789_s16 }
 0x26c   : > { %p925_p2 = pnand %p928_p1, %p1150_p6 }
 0x26e   : > { %1052 = dma.done.wait (!%p925_p2), %s790_s17, 64  }
 0x26f   : > { %1054 = vsyncadd (!%p925_p2), %s790_s17, 4294967232  ;;  %p15_p3 = scmp.ge.s32.totalorder %s1133_s24, 4   ;;  %s1508_s18 = smov %s1061_s19 }
 0x270   : > { %s1509_s19 = smov %s1065_s20  ;;  %s1510_s20 = smov %s1144_s27 }
 0x271   : > { %s1511_s21 = smov %s1133_s24  ;;  %17 = sbr.rel (!%p15_p3) target bundleno = 3 (0x3), region = 75 }
 0x278   :  { %795 = vsyncpa [#allocation3], 1 }
 0x279   :  { %797 = vsyncpa [#allocation3 + $0x1], 1 }

</bundles_post_ra>
